<compile_context>
chip_gen: v6e
topology: v6e:2x2x1
jax: 0.10.0
libtpu: 0.0.40
codegen_flags: <defaults>
</compile_context>

<pallas_src>
import functools
import math

import jax
import jax.numpy as jnp
from jax.experimental import pallas as pl
from jax.experimental.pallas import tpu as pltpu


def _vmem_limit_bytes():
    # Per-generation VMEM cap (v7x: 64 MiB per TC, v5e/v6e: 128 MiB); leave
    # headroom for compiler-internal scratch and cap at ~100 MiB.
    try:
        cap = pltpu.get_tpu_info().vmem_capacity_bytes
    except Exception:  # not on TPU / API mismatch -> conservative default
        cap = 64 * 1024 * 1024
    return int(min(cap - 16 * 1024 * 1024, 100 * 1024 * 1024))


# -----------------------------------------------------------------------------
# Kernel 1: fused multi-head self-attention + residual + LayerNorm1.
#   grid = (B, H); B is "parallel" (megacore), H is "arbitrary" (per-head
#   contributions to the output projection are accumulated in VMEM scratch).
# -----------------------------------------------------------------------------
def _mha_ln_kernel(x_ref, wq_ref, wk_ref, wv_ref, bq_ref, bk_ref, bv_ref,
                   wo_ref, bo_ref, g_ref, b_ref, s1_ref, attnw_ref, acc_ref,
                   *, num_heads, d_head):
    h = pl.program_id(1)

    @pl.when(h == 0)
    def _():
        acc_ref[...] = jnp.zeros_like(acc_ref)

    x_f32 = x_ref[0].astype(jnp.float32)          # (S, D) residual / LN path
    x_bf = x_f32.astype(jnp.bfloat16)             # MXU operand

    # Per-head projections (weights arrive in bf16, head-major layout).
    q = jnp.dot(x_bf, wq_ref[0], preferred_element_type=jnp.float32) + bq_ref[0]
    k = jnp.dot(x_bf, wk_ref[0], preferred_element_type=jnp.float32) + bk_ref[0]
    v = jnp.dot(x_bf, wv_ref[0], preferred_element_type=jnp.float32) + bv_ref[0]
    # Fold 1/sqrt(d_head) into q: O(S*d_head) instead of O(S^2) on the scores.
    q = q * (1.0 / math.sqrt(d_head))

    # Scores (S, S): contract the d_head axis directly (no explicit transpose).
    s = jax.lax.dot_general(q.astype(jnp.bfloat16), k.astype(jnp.bfloat16),
                            dimension_numbers=(((1,), (1,)), ((), ())),
                            preferred_element_type=jnp.float32)
    # TODO(synk): apply mask / DistMatrix bias here when their semantics are known.
    s = s - jnp.max(s, axis=-1, keepdims=True)
    p = jnp.exp(s)
    # Exact reciprocal so the stored attention weights sum to 1.
    a = p * (1.0 / jnp.sum(p, axis=-1, keepdims=True))
    attnw_ref[0, 0] = a.astype(attnw_ref.dtype)   # (S, S), bf16 by default

    ctx = jnp.dot(a.astype(jnp.bfloat16), v.astype(jnp.bfloat16),
                  preferred_element_type=jnp.float32)            # (S, d_head)
    # Per-head output projection, accumulated in f32 scratch: ctx_h @ Wo_h.
    acc_ref[...] += jnp.dot(ctx.astype(jnp.bfloat16), wo_ref[0],
                            preferred_element_type=jnp.float32)  # (S, D)

    @pl.when(h == num_heads - 1)
    def _():
        # Fused epilogue: residual + LayerNorm1 (eps=1e-5, biased variance).
        y = x_f32 + acc_ref[...] + bo_ref[...]
        mu = jnp.mean(y, axis=-1, keepdims=True)
        var = jnp.mean((y - mu) * (y - mu), axis=-1, keepdims=True)
        norm = (y - mu) * jax.lax.rsqrt(var + 1e-5)
        s1_ref[0] = (norm * g_ref[...] + b_ref[...]).astype(s1_ref.dtype)


def mha_ln1(x, wq, wk, wv, bq, bk, bv, wo, bo, ln_g, ln_b, *, num_heads,
            attn_weights_dtype=jnp.bfloat16):
    B, S, D = x.shape
    d_head = D // num_heads
    kernel = functools.partial(_mha_ln_kernel, num_heads=num_heads, d_head=d_head)

    def per_head(shape):
        return pl.BlockSpec(shape, lambda b, h: (h,) + (0,) * (len(shape) - 1))

    def resident(shape):  # constant block index -> single buffer
        nd = len(shape)
        return pl.BlockSpec(shape, lambda b, h: (0,) * nd,
                            pipeline_mode=pl.Buffered(1))

    # TODO(synk): for very long S, stream K/V tiles flash-style instead of
    # materializing the full (S, S) score block per head.
    return pl.pallas_call(
        kernel,
        out_shape=(jax.ShapeDtypeStruct((B, S, D), x.dtype),
                   jax.ShapeDtypeStruct((B, num_heads, S, S), attn_weights_dtype)),
        grid=(B, num_heads),
        in_specs=[
            pl.BlockSpec((1, S, D), lambda b, h: (b, 0, 0)),        # x
            per_head((1, D, d_head)),                               # wq (bf16)
            per_head((1, D, d_head)),                               # wk (bf16)
            per_head((1, D, d_head)),                               # wv (bf16)
            per_head((1, 1, d_head)),                               # bq
            per_head((1, 1, d_head)),                               # bk
            per_head((1, 1, d_head)),                               # bv
            per_head((1, d_head, D)),                               # wo (bf16)
            resident((1, D)),                                       # bo
            resident((1, D)),                                       # ln1 gamma
            resident((1, D)),                                       # ln1 beta
        ],
        out_specs=(pl.BlockSpec((1, S, D), lambda b, h: (b, 0, 0)),
                   pl.BlockSpec((1, 1, S, S), lambda b, h: (b, h, 0, 0))),
        scratch_shapes=[pltpu.VMEM((S, D), jnp.float32)],
        compiler_params=pltpu.CompilerParams(
            dimension_semantics=("parallel", "arbitrary"),
            vmem_limit_bytes=_vmem_limit_bytes()),
    )(x, wq, wk, wv, bq, bk, bv, wo, bo, ln_g, ln_b)


# -----------------------------------------------------------------------------
# Kernel 2: position-wise FFN + residual + LayerNorm2, row-tiled & pipelined.
#   s2 = LayerNorm(x + relu(x @ W1 + b1) @ W2 + b2)
# -----------------------------------------------------------------------------
def _ffn_ln_kernel(x_ref, w1_ref, b1_ref, w2_ref, b2_ref, g_ref, b_ref, o_ref):
    x = x_ref[...].astype(jnp.float32)                               # (TM, D)
    hid = jnp.dot(x.astype(jnp.bfloat16), w1_ref[...],
                  preferred_element_type=jnp.float32) + b1_ref[...]
    hid = jnp.maximum(hid, 0.0)
    ff = jnp.dot(hid.astype(jnp.bfloat16), w2_ref[...],
                 preferred_element_type=jnp.float32) + b2_ref[...]
    y = x + ff
    mu = jnp.mean(y, axis=-1, keepdims=True)
    var = jnp.mean((y - mu) * (y - mu), axis=-1, keepdims=True)
    norm = (y - mu) * jax.lax.rsqrt(var + 1e-5)
    o_ref[...] = (norm * g_ref[...] + b_ref[...]).astype(o_ref.dtype)


def ffn_ln2(x2d, w1, b1, w2, b2, ln_g, ln_b, *, row_tile=256):
    N, D = x2d.shape
    d_ff = w1.shape[1]
    # Row tile: multiple of 8, at most row_tile, and (when possible) >= 2 grid
    # steps so both v7x TensorCores get work.  Rows are independent (per-row LN),
    # so a padded partial last block is harmless (OOB writes are dropped).
    if N <= 8:
        tm = N
    else:
        tm = min(row_tile, max(8, (((N + 1) // 2 + 7) // 8) * 8))

    def resident(shape):  # constant block index -> single buffer
        nd = len(shape)
        return pl.BlockSpec(shape, lambda i: (0,) * nd,
                            pipeline_mode=pl.Buffered(1))

    return pl.pallas_call(
        _ffn_ln_kernel,
        out_shape=jax.ShapeDtypeStruct((N, D), x2d.dtype),
        grid=(pl.cdiv(N, tm),),
        in_specs=[pl.BlockSpec((tm, D), lambda i: (i, 0)),           # x rows (pipelined)
                  resident((D, d_ff)), resident((1, d_ff)),          # W1 (bf16), b1
                  resident((d_ff, D)), resident((1, D)),             # W2 (bf16), b2
                  resident((1, D)), resident((1, D))],               # ln2 gamma/beta
        out_specs=pl.BlockSpec((tm, D), lambda i: (i, 0)),
        compiler_params=pltpu.CompilerParams(
            dimension_semantics=("parallel",),
            vmem_limit_bytes=_vmem_limit_bytes()),
    )(x2d, w1, b1, w2, b2, ln_g, ln_b)


# -----------------------------------------------------------------------------
# EncoderLayer forward (glue in plain JAX, hot paths fused into the two kernels).
# -----------------------------------------------------------------------------
def init_encoder_params(key, d_model, num_heads, d_ff):
    d_head = d_model // num_heads
    ks = jax.random.split(key, 6)
    scale = 0.02

    def w(k, shape):  # matmul weights stored in bf16 (MXU-native), biases/LN in f32
        return (scale * jax.random.normal(k, shape, jnp.float32)).astype(jnp.bfloat16)

    return dict(
        # Head-major Q/K/V projection weights: q_h = x @ wq[h]  (H, D, d_head).
        wq=w(ks[0], (num_heads, d_model, d_head)),
        wk=w(ks[1], (num_heads, d_model, d_head)),
        wv=w(ks[2], (num_heads, d_model, d_head)),
        bq=jnp.zeros((num_heads, 1, d_head), jnp.float32),
        bk=jnp.zeros((num_heads, 1, d_head), jnp.float32),
        bv=jnp.zeros((num_heads, 1, d_head), jnp.float32),
        # Head-major output projection: attn_out = sum_h ctx_h @ wo[h]  (H, d_head, D).
        wo=w(ks[3], (num_heads, d_head, d_model)),
        bo=jnp.zeros((1, d_model), jnp.float32),
        w1=w(ks[4], (d_model, d_ff)),
        b1=jnp.zeros((1, d_ff), jnp.float32),
        w2=w(ks[5], (d_ff, d_model)),
        b2=jnp.zeros((1, d_model), jnp.float32),
        ln1_g=jnp.ones((1, d_model), jnp.float32),
        ln1_b=jnp.zeros((1, d_model), jnp.float32),
        ln2_g=jnp.ones((1, d_model), jnp.float32),
        ln2_b=jnp.zeros((1, d_model), jnp.float32),
    )


def encoder_layer_forward(params, x, num_heads, *, attn_weights_dtype=jnp.bfloat16):
    B, S, D = x.shape
    # Sublayer 1: MHA + residual + LayerNorm1 (fused, per-(batch, head) tiled).
    s1, attn_w = mha_ln1(x, params["wq"], params["wk"], params["wv"],
                         params["bq"], params["bk"], params["bv"],
                         params["wo"], params["bo"],
                         params["ln1_g"], params["ln1_b"],
                         num_heads=num_heads,
                         attn_weights_dtype=attn_weights_dtype)
    # Sublayer 2: FFN + residual + LayerNorm2 (fused, row-tiled).
    s2 = ffn_ln2(s1.reshape(B * S, D), params["w1"], params["b1"],
                 params["w2"], params["b2"], params["ln2_g"], params["ln2_b"])
    return s2.reshape(B, S, D), attn_w


if __name__ == "__main__":
    B, S = 2, 8
    d_model, num_heads, d_ff = 32, 4, 64

    key = jax.random.PRNGKey(0)
    kx, kp = jax.random.split(key)
    x = jax.random.normal(kx, (B, S, d_model), jnp.float32)
    params = init_encoder_params(kp, d_model, num_heads, d_ff)

    out, attn_w = encoder_layer_forward(params, x, num_heads)
    jax.block_until_ready((out, attn_w))

    assert out.shape == (B, S, d_model)
    assert attn_w.shape == (B, num_heads, S, S)
    assert bool(jnp.all(jnp.isfinite(out.astype(jnp.float32))))
    assert bool(jnp.all(jnp.isfinite(attn_w.astype(jnp.float32))))
    print("KERNEL_OK")
</pallas_src>

<mosaic_0001>
module attributes {stable_mosaic.version = 11 : i64} {
  func.func @_mha_ln_kernel(%arg0: i32, %arg1: i32, %arg2: memref<1x8x32xf32, #tpu.memory_space<vmem>>, %arg3: memref<1x32x8xbf16, #tpu.memory_space<vmem>>, %arg4: memref<1x32x8xbf16, #tpu.memory_space<vmem>>, %arg5: memref<1x32x8xbf16, #tpu.memory_space<vmem>>, %arg6: memref<1x1x8xf32, #tpu.memory_space<vmem>>, %arg7: memref<1x1x8xf32, #tpu.memory_space<vmem>>, %arg8: memref<1x1x8xf32, #tpu.memory_space<vmem>>, %arg9: memref<1x8x32xbf16, #tpu.memory_space<vmem>>, %arg10: memref<1x32xf32, #tpu.memory_space<vmem>>, %arg11: memref<1x32xf32, #tpu.memory_space<vmem>>, %arg12: memref<1x32xf32, #tpu.memory_space<vmem>>, %arg13: memref<1x8x32xf32, #tpu.memory_space<vmem>>, %arg14: memref<1x1x8x8xbf16, #tpu.memory_space<vmem>>, %arg15: memref<8x32xf32, #tpu.memory_space<vmem>>) attributes {dimension_semantics = [#tpu.dimension_semantics<parallel>, #tpu.dimension_semantics<arbitrary>], iteration_bounds = array<i64: 2, 4>, scalar_prefetch = 0 : i64, scratch_operands = 1 : i64, tpu.core_type = #tpu.core_type<tc>, window_params = [{transform_indices = @transform_0, window_bounds = array<i64: 1, 8, 32>}, {transform_indices = @transform_1, window_bounds = array<i64: 1, 32, 8>}, {transform_indices = @transform_2, window_bounds = array<i64: 1, 32, 8>}, {transform_indices = @transform_3, window_bounds = array<i64: 1, 32, 8>}, {transform_indices = @transform_4, window_bounds = array<i64: 1, 1, 8>}, {transform_indices = @transform_5, window_bounds = array<i64: 1, 1, 8>}, {transform_indices = @transform_6, window_bounds = array<i64: 1, 1, 8>}, {transform_indices = @transform_7, window_bounds = array<i64: 1, 8, 32>}, {pipeline_mode = #tpu.pipeline_mode<synchronous>, transform_indices = @transform_8, window_bounds = array<i64: 1, 32>}, {pipeline_mode = #tpu.pipeline_mode<synchronous>, transform_indices = @transform_9, window_bounds = array<i64: 1, 32>}, {pipeline_mode = #tpu.pipeline_mode<synchronous>, transform_indices = @transform_10, window_bounds = array<i64: 1, 32>}, {transform_indices = @transform_11, window_bounds = array<i64: 1, 8, 32>}, {transform_indices = @transform_12, window_bounds = array<i64: 1, 1, 8, 8>}]} {
    %c0_i32 = arith.constant 0 : i32
    %0 = arith.cmpi eq, %arg1, %c0_i32 : i32
    %1 = arith.extui %0 : i1 to i32
    %c0_i32_0 = arith.constant 0 : i32
    %2 = arith.cmpi ne, %1, %c0_i32_0 : i32
    scf.if %2 {
      %cst_42 = arith.constant 0.000000e+00 : f32
      %60 = vector.broadcast %cst_42 : f32 to vector<8x32xf32>
      %c0_43 = arith.constant 0 : index
      %c0_44 = arith.constant 0 : index
      %61 = vector.load %arg15[%c0_43, %c0_44] : memref<8x32xf32, #tpu.memory_space<vmem>>, vector<8x32xf32>
      tpu.vector_store %arg15[%c0_43, %c0_44], %60 {strides = array<i32>} : memref<8x32xf32, #tpu.memory_space<vmem>>, vector<8x32xf32>,
    } else {
    }
    %c0 = arith.constant 0 : index
    %c0_1 = arith.constant 0 : index
    %c0_2 = arith.constant 0 : index
    %3 = vector.load %arg2[%c0, %c0_1, %c0_2] : memref<1x8x32xf32, #tpu.memory_space<vmem>>, vector<1x8x32xf32>
    %4 = vector.shape_cast %3 : vector<1x8x32xf32> to vector<8x32xf32>
    %5 = arith.truncf %4 : vector<8x32xf32> to vector<8x32xbf16>
    %c0_3 = arith.constant 0 : index
    %c0_4 = arith.constant 0 : index
    %c0_5 = arith.constant 0 : index
    %6 = vector.load %arg3[%c0_3, %c0_4, %c0_5] : memref<1x32x8xbf16, #tpu.memory_space<vmem>>, vector<1x32x8xbf16>
    %7 = vector.shape_cast %6 : vector<1x32x8xbf16> to vector<32x8xbf16>
    %cst = arith.constant dense<0.000000e+00> : vector<8x8xf32>
    %8 = tpu.matmul %5, %7, %cst {dimension_numbers = #tpu.dot_dimension_numbers<[1], [0], [0], [1], [0, 0, 1, 1], [], []>} : vector<8x32xbf16>, vector<32x8xbf16>, vector<8x8xf32> -> vector<8x8xf32>
    %c0_6 = arith.constant 0 : index
    %c0_7 = arith.constant 0 : index
    %c0_8 = arith.constant 0 : index
    %9 = vector.load %arg6[%c0_6, %c0_7, %c0_8] : memref<1x1x8xf32, #tpu.memory_space<vmem>>, vector<1x1x8xf32>
    %10 = vector.shape_cast %9 : vector<1x1x8xf32> to vector<1x8xf32>
    %11 = vector.broadcast %10 : vector<1x8xf32> to vector<8x8xf32>
    %12 = arith.addf %8, %11 : vector<8x8xf32>
    %c0_9 = arith.constant 0 : index
    %c0_10 = arith.constant 0 : index
    %c0_11 = arith.constant 0 : index
    %13 = vector.load %arg4[%c0_9, %c0_10, %c0_11] : memref<1x32x8xbf16, #tpu.memory_space<vmem>>, vector<1x32x8xbf16>
    %14 = vector.shape_cast %13 : vector<1x32x8xbf16> to vector<32x8xbf16>
    %cst_12 = arith.constant dense<0.000000e+00> : vector<8x8xf32>
    %15 = tpu.matmul %5, %14, %cst_12 {dimension_numbers = #tpu.dot_dimension_numbers<[1], [0], [0], [1], [0, 0, 1, 1], [], []>} : vector<8x32xbf16>, vector<32x8xbf16>, vector<8x8xf32> -> vector<8x8xf32>
    %c0_13 = arith.constant 0 : index
    %c0_14 = arith.constant 0 : index
    %c0_15 = arith.constant 0 : index
    %16 = vector.load %arg7[%c0_13, %c0_14, %c0_15] : memref<1x1x8xf32, #tpu.memory_space<vmem>>, vector<1x1x8xf32>
    %17 = vector.shape_cast %16 : vector<1x1x8xf32> to vector<1x8xf32>
    %18 = vector.broadcast %17 : vector<1x8xf32> to vector<8x8xf32>
    %19 = arith.addf %15, %18 : vector<8x8xf32>
    %c0_16 = arith.constant 0 : index
    %c0_17 = arith.constant 0 : index
    %c0_18 = arith.constant 0 : index
    %20 = vector.load %arg5[%c0_16, %c0_17, %c0_18] : memref<1x32x8xbf16, #tpu.memory_space<vmem>>, vector<1x32x8xbf16>
    %21 = vector.shape_cast %20 : vector<1x32x8xbf16> to vector<32x8xbf16>
    %cst_19 = arith.constant dense<0.000000e+00> : vector<8x8xf32>
    %22 = tpu.matmul %5, %21, %cst_19 {dimension_numbers = #tpu.dot_dimension_numbers<[1], [0], [0], [1], [0, 0, 1, 1], [], []>} : vector<8x32xbf16>, vector<32x8xbf16>, vector<8x8xf32> -> vector<8x8xf32>
    %c0_20 = arith.constant 0 : index
    %c0_21 = arith.constant 0 : index
    %c0_22 = arith.constant 0 : index
    %23 = vector.load %arg8[%c0_20, %c0_21, %c0_22] : memref<1x1x8xf32, #tpu.memory_space<vmem>>, vector<1x1x8xf32>
    %24 = vector.shape_cast %23 : vector<1x1x8xf32> to vector<1x8xf32>
    %25 = vector.broadcast %24 : vector<1x8xf32> to vector<8x8xf32>
    %26 = arith.addf %22, %25 : vector<8x8xf32>
    %cst_23 = arith.constant 0.353553385 : f32
    %27 = vector.broadcast %cst_23 : f32 to vector<8x8xf32>
    %28 = arith.mulf %12, %27 : vector<8x8xf32>
    %29 = arith.truncf %28 : vector<8x8xf32> to vector<8x8xbf16>
    %30 = arith.truncf %19 : vector<8x8xf32> to vector<8x8xbf16>
    %cst_24 = arith.constant dense<0.000000e+00> : vector<8x8xf32>
    %31 = tpu.matmul %29, %30, %cst_24 {dimension_numbers = #tpu.dot_dimension_numbers<[1], [1], [0], [0], [0, 0, 1, 0], [], []>} : vector<8x8xbf16>, vector<8x8xbf16>, vector<8x8xf32> -> vector<8x8xf32>
    %cst_25 = arith.constant dense<0xFF800000> : vector<8xf32>
    %32 = vector.multi_reduction <maximumf>, %31, %cst_25 [1] : vector<8x8xf32> to vector<8xf32>
    %33 = vector.shape_cast %32 : vector<8xf32> to vector<8x1xf32>
    %34 = vector.broadcast %33 : vector<8x1xf32> to vector<8x8xf32>
    %35 = arith.subf %31, %34 : vector<8x8xf32>
    %36 = math.exp %35 : vector<8x8xf32>
    %cst_26 = arith.constant dense<0.000000e+00> : vector<8xf32>
    %37 = vector.multi_reduction <add>, %36, %cst_26 [1] : vector<8x8xf32> to vector<8xf32>
    %38 = vector.shape_cast %37 : vector<8xf32> to vector<8x1xf32>
    %cst_27 = arith.constant 1.000000e+00 : f32
    %39 = vector.broadcast %cst_27 : f32 to vector<8x1xf32>
    %40 = arith.divf %39, %38 : vector<8x1xf32>
    %41 = vector.broadcast %40 : vector<8x1xf32> to vector<8x8xf32>
    %42 = arith.mulf %36, %41 : vector<8x8xf32>
    %43 = arith.truncf %42 : vector<8x8xf32> to vector<8x8xbf16>
    %c0_28 = arith.constant 0 : index
    %c0_29 = arith.constant 0 : index
    %c0_30 = arith.constant 0 : index
    %c0_31 = arith.constant 0 : index
    %44 = vector.load %arg14[%c0_28, %c0_29, %c0_30, %c0_31] : memref<1x1x8x8xbf16, #tpu.memory_space<vmem>>, vector<1x1x8x8xbf16>
    %45 = vector.shape_cast %44 : vector<1x1x8x8xbf16> to vector<8x8xbf16>
    %46 = vector.shape_cast %43 : vector<8x8xbf16> to vector<1x1x8x8xbf16>
    tpu.vector_store %arg14[%c0_28, %c0_29, %c0_30, %c0_31], %46 {strides = array<i32>} : memref<1x1x8x8xbf16, #tpu.memory_space<vmem>>, vector<1x1x8x8xbf16>,
    %47 = arith.truncf %42 : vector<8x8xf32> to vector<8x8xbf16>
    %48 = arith.truncf %26 : vector<8x8xf32> to vector<8x8xbf16>
    %cst_32 = arith.constant dense<0.000000e+00> : vector<8x8xf32>
    %49 = tpu.matmul %47, %48, %cst_32 {dimension_numbers = #tpu.dot_dimension_numbers<[1], [0], [0], [1], [0, 0, 1, 1], [], []>} : vector<8x8xbf16>, vector<8x8xbf16>, vector<8x8xf32> -> vector<8x8xf32>
    %c0_33 = arith.constant 0 : index
    %c0_34 = arith.constant 0 : index
    %50 = vector.load %arg15[%c0_33, %c0_34] : memref<8x32xf32, #tpu.memory_space<vmem>>, vector<8x32xf32>
    %51 = arith.truncf %49 : vector<8x8xf32> to vector<8x8xbf16>
    %c0_35 = arith.constant 0 : index
    %c0_36 = arith.constant 0 : index
    %c0_37 = arith.constant 0 : index
    %52 = vector.load %arg9[%c0_35, %c0_36, %c0_37] : memref<1x8x32xbf16, #tpu.memory_space<vmem>>, vector<1x8x32xbf16>
    %53 = vector.shape_cast %52 : vector<1x8x32xbf16> to vector<8x32xbf16>
    %cst_38 = arith.constant dense<0.000000e+00> : vector<8x32xf32>
    %54 = tpu.matmul %51, %53, %cst_38 {dimension_numbers = #tpu.dot_dimension_numbers<[1], [0], [0], [1], [0, 0, 1, 1], [], []>} : vector<8x8xbf16>, vector<8x32xbf16>, vector<8x32xf32> -> vector<8x32xf32>
    %55 = arith.addf %50, %54 : vector<8x32xf32>
    %c0_39 = arith.constant 0 : index
    %c0_40 = arith.constant 0 : index
    %56 = vector.load %arg15[%c0_39, %c0_40] : memref<8x32xf32, #tpu.memory_space<vmem>>, vector<8x32xf32>
    tpu.vector_store %arg15[%c0_39, %c0_40], %55 {strides = array<i32>} : memref<8x32xf32, #tpu.memory_space<vmem>>, vector<8x32xf32>,
    %c3_i32 = arith.constant 3 : i32
    %57 = arith.cmpi eq, %arg1, %c3_i32 : i32
    %58 = arith.extui %57 : i1 to i32
    %c0_i32_41 = arith.constant 0 : i32
    %59 = arith.cmpi ne, %58, %c0_i32_41 : i32
    scf.if %59 {
      %c0_42 = arith.constant 0 : index
      %c0_43 = arith.constant 0 : index
      %60 = vector.load %arg15[%c0_42, %c0_43] : memref<8x32xf32, #tpu.memory_space<vmem>>, vector<8x32xf32>
      %61 = arith.addf %4, %60 : vector<8x32xf32>
      %c0_44 = arith.constant 0 : index
      %c0_45 = arith.constant 0 : index
      %62 = vector.load %arg10[%c0_44, %c0_45] : memref<1x32xf32, #tpu.memory_space<vmem>>, vector<1x32xf32>
      %63 = vector.broadcast %62 : vector<1x32xf32> to vector<8x32xf32>
      %64 = arith.addf %61, %63 : vector<8x32xf32>
      %cst_46 = arith.constant dense<0.000000e+00> : vector<8xf32>
      %65 = vector.multi_reduction <add>, %64, %cst_46 [1] : vector<8x32xf32> to vector<8xf32>
      %66 = vector.shape_cast %65 : vector<8xf32> to vector<8x1xf32>
      %cst_47 = arith.constant 3.200000e+01 : f32
      %67 = vector.broadcast %cst_47 : f32 to vector<8x1xf32>
      %68 = arith.divf %66, %67 : vector<8x1xf32>
      %69 = vector.broadcast %68 : vector<8x1xf32> to vector<8x32xf32>
      %70 = arith.subf %64, %69 : vector<8x32xf32>
      %71 = vector.broadcast %68 : vector<8x1xf32> to vector<8x32xf32>
      %72 = arith.subf %64, %71 : vector<8x32xf32>
      %73 = arith.mulf %70, %72 : vector<8x32xf32>
      %cst_48 = arith.constant dense<0.000000e+00> : vector<8xf32>
      %74 = vector.multi_reduction <add>, %73, %cst_48 [1] : vector<8x32xf32> to vector<8xf32>
      %75 = vector.shape_cast %74 : vector<8xf32> to vector<8x1xf32>
      %cst_49 = arith.constant 3.200000e+01 : f32
      %76 = vector.broadcast %cst_49 : f32 to vector<8x1xf32>
      %77 = arith.divf %75, %76 : vector<8x1xf32>
      %78 = vector.broadcast %68 : vector<8x1xf32> to vector<8x32xf32>
      %79 = arith.subf %64, %78 : vector<8x32xf32>
      %cst_50 = arith.constant 9.99999974E-6 : f32
      %80 = vector.broadcast %cst_50 : f32 to vector<8x1xf32>
      %81 = arith.addf %77, %80 : vector<8x1xf32>
      %82 = math.rsqrt %81 : vector<8x1xf32>
      %83 = vector.broadcast %82 : vector<8x1xf32> to vector<8x32xf32>
      %84 = arith.mulf %79, %83 : vector<8x32xf32>
      %c0_51 = arith.constant 0 : index
      %c0_52 = arith.constant 0 : index
      %85 = vector.load %arg11[%c0_51, %c0_52] : memref<1x32xf32, #tpu.memory_space<vmem>>, vector<1x32xf32>
      %86 = vector.broadcast %85 : vector<1x32xf32> to vector<8x32xf32>
      %87 = arith.mulf %84, %86 : vector<8x32xf32>
      %c0_53 = arith.constant 0 : index
      %c0_54 = arith.constant 0 : index
      %88 = vector.load %arg12[%c0_53, %c0_54] : memref<1x32xf32, #tpu.memory_space<vmem>>, vector<1x32xf32>
      %89 = vector.broadcast %88 : vector<1x32xf32> to vector<8x32xf32>
      %90 = arith.addf %87, %89 : vector<8x32xf32>
      %c0_55 = arith.constant 0 : index
      %c0_56 = arith.constant 0 : index
      %c0_57 = arith.constant 0 : index
      %91 = vector.load %arg13[%c0_55, %c0_56, %c0_57] : memref<1x8x32xf32, #tpu.memory_space<vmem>>, vector<1x8x32xf32>
      %92 = vector.shape_cast %91 : vector<1x8x32xf32> to vector<8x32xf32>
      %93 = vector.shape_cast %90 : vector<8x32xf32> to vector<1x8x32xf32>
      tpu.vector_store %arg13[%c0_55, %c0_56, %c0_57], %93 {strides = array<i32>} : memref<1x8x32xf32, #tpu.memory_space<vmem>>, vector<1x8x32xf32>,
    } else {
    }
    return
  }
  func.func @transform_0(%arg0: i32, %arg1: i32) -> (i32, i32, i32) {
    %c0_i32 = arith.constant 0 : i32
    %c0_i32_0 = arith.constant 0 : i32
    %c0_i32_1 = arith.constant 0 : i32
    return %arg0, %c0_i32, %c0_i32_0 : i32, i32, i32
  }
  func.func @transform_1(%arg0: i32, %arg1: i32) -> (i32, i32, i32) {
    %c0_i32 = arith.constant 0 : i32
    %c0_i32_0 = arith.constant 0 : i32
    %c0_i32_1 = arith.constant 0 : i32
    return %arg1, %c0_i32, %c0_i32_0 : i32, i32, i32
  }
  func.func @transform_2(%arg0: i32, %arg1: i32) -> (i32, i32, i32) {
    %c0_i32 = arith.constant 0 : i32
    %c0_i32_0 = arith.constant 0 : i32
    %c0_i32_1 = arith.constant 0 : i32
    return %arg1, %c0_i32, %c0_i32_0 : i32, i32, i32
  }
  func.func @transform_3(%arg0: i32, %arg1: i32) -> (i32, i32, i32) {
    %c0_i32 = arith.constant 0 : i32
    %c0_i32_0 = arith.constant 0 : i32
    %c0_i32_1 = arith.constant 0 : i32
    return %arg1, %c0_i32, %c0_i32_0 : i32, i32, i32
  }
  func.func @transform_4(%arg0: i32, %arg1: i32) -> (i32, i32, i32) {
    %c0_i32 = arith.constant 0 : i32
    %c0_i32_0 = arith.constant 0 : i32
    %c0_i32_1 = arith.constant 0 : i32
    return %arg1, %c0_i32, %c0_i32_0 : i32, i32, i32
  }
  func.func @transform_5(%arg0: i32, %arg1: i32) -> (i32, i32, i32) {
    %c0_i32 = arith.constant 0 : i32
    %c0_i32_0 = arith.constant 0 : i32
    %c0_i32_1 = arith.constant 0 : i32
    return %arg1, %c0_i32, %c0_i32_0 : i32, i32, i32
  }
  func.func @transform_6(%arg0: i32, %arg1: i32) -> (i32, i32, i32) {
    %c0_i32 = arith.constant 0 : i32
    %c0_i32_0 = arith.constant 0 : i32
    %c0_i32_1 = arith.constant 0 : i32
    return %arg1, %c0_i32, %c0_i32_0 : i32, i32, i32
  }
  func.func @transform_7(%arg0: i32, %arg1: i32) -> (i32, i32, i32) {
    %c0_i32 = arith.constant 0 : i32
    %c0_i32_0 = arith.constant 0 : i32
    %c0_i32_1 = arith.constant 0 : i32
    return %arg1, %c0_i32, %c0_i32_0 : i32, i32, i32
  }
  func.func @transform_8(%arg0: i32, %arg1: i32) -> (i32, i32) {
    %c0_i32 = arith.constant 0 : i32
    %c0_i32_0 = arith.constant 0 : i32
    %c0_i32_1 = arith.constant 0 : i32
    return %c0_i32, %c0_i32_0 : i32, i32
  }
  func.func @transform_9(%arg0: i32, %arg1: i32) -> (i32, i32) {
    %c0_i32 = arith.constant 0 : i32
    %c0_i32_0 = arith.constant 0 : i32
    %c0_i32_1 = arith.constant 0 : i32
    return %c0_i32, %c0_i32_0 : i32, i32
  }
  func.func @transform_10(%arg0: i32, %arg1: i32) -> (i32, i32) {
    %c0_i32 = arith.constant 0 : i32
    %c0_i32_0 = arith.constant 0 : i32
    %c0_i32_1 = arith.constant 0 : i32
    return %c0_i32, %c0_i32_0 : i32, i32
  }
  func.func @transform_11(%arg0: i32, %arg1: i32) -> (i32, i32, i32) {
    %c0_i32 = arith.constant 0 : i32
    %c0_i32_0 = arith.constant 0 : i32
    %c0_i32_1 = arith.constant 0 : i32
    return %arg0, %c0_i32, %c0_i32_0 : i32, i32, i32
  }
  func.func @transform_12(%arg0: i32, %arg1: i32) -> (i32, i32, i32, i32) {
    %c0_i32 = arith.constant 0 : i32
    %c0_i32_0 = arith.constant 0 : i32
    %c0_i32_1 = arith.constant 0 : i32
    return %arg0, %arg1, %c0_i32, %c0_i32_0 : i32, i32, i32, i32
  }
}

</mosaic_0001>

<bundles_post_ra>
// kernel: tpu_custom_call.1
= control target key start
LH: loop header
LB: loop body
LE: loop exit
PB: predicated region body
PF: predicated region fallthrough
CT: control target
= control target key end

     0   :  { %s1922_s0 = inlined_call_operand.vmem [shape: f32[2,8,32], index: 0, kind: input, shape index: {}]   ;;  %s1923_s1 = inlined_call_operand.vmem [shape: bf16[4,32,8], index: 1, kind: input, shape index: {}]   ;;  %s1924_s2 = inlined_call_operand.vmem [shape: bf16[4,32,8], index: 2, kind: input, shape index: {}]   ;;  %s1925_s3 = inlined_call_operand.vmem [shape: bf16[4,32,8], index: 3, kind: input, shape index: {}]   ;;  %s1926_s4 = inlined_call_operand.vmem [shape: f32[4,1,8], index: 4, kind: input, shape index: {}]   ;;  %s1927_s5 = inlined_call_operand.vmem [shape: f32[4,1,8], index: 5, kind: input, shape index: {}]   ;;  %s1928_s6 = inlined_call_operand.vmem [shape: f32[4,1,8], index: 6, kind: input, shape index: {}]   ;;  %s1929_s7 = inlined_call_operand.vmem [shape: bf16[4,8,32], index: 7, kind: input, shape index: {}]   ;;  %s1930_s8 = inlined_call_operand.vmem [shape: f32[1,32], index: 8, kind: input, shape index: {}]   ;;  %s1931_s9 = inlined_call_operand.vmem [shape: f32[1,32], index: 9, kind: input, shape index: {}]   ;;  %s1932_s10 = inlined_call_operand.vmem [shape: f32[1,32], index: 10, kind: input, shape index: {}]   ;;  %s1933_s11 = inlined_call_operand.hbm [shape: f32[2,8,32], index: 11, kind: output, shape index: {0}]   ;;  %s1934_s12 = inlined_call_operand.hbm [shape: bf16[2,4,8,8], index: 12, kind: output, shape index: {1}]  }
   0x1   :  { %1957 = sst [smem:[#allocation26_spill]] %s1922_s0 }
   0x2   :  { %1958 = sst [smem:[#allocation27_spill]] %s1923_s1 }
   0x3   :  { %1959 = sst [smem:[#allocation28_spill]] %s1924_s2 }
   0x4   :  { %1960 = sst [smem:[#allocation29_spill]] %s1931_s9 }
   0x5   :  { %1961 = sst [smem:[#allocation30_spill]] %s1932_s10 }
   0x6   :  { %1962 = sst [smem:[#allocation31_spill]] %s1933_s11 }
   0x7   :  { %1963 = sst [smem:[#allocation32_spill]] %s1934_s12 }
   0x8   :  { %18 = vsyncpa [#allocation4], 0 }
   0x9   :  { %20 = vsyncpa [#allocation4 + $0x1], 0 }
   0xa   :  { %21 = vsyncpa [#allocation6], 0 }
   0xb   :  { %23 = vsyncpa [#allocation6 + $0x1], 0  ;;  %s1612_s21 = smov 0   ;;  %s1614_s22 = smov 0  }
   0xc   :  { %s1616_s23 = smov 0   ;;  %s1618_s24 = smov 0  }
   0xd   :  { %s1620_s25 = smov 0   ;;  %s1622_s26 = smov 0  }
   0xe   :  { %s1624_s27 = smov 0   ;;  %s1626_s28 = smov 0  }
   0xf   :  { %s1628_s29 = smov 0   ;;  %s1630_s30 = smov 0  }
  0x10   :  { %s1632_s13 = smov 0  }
  0x11 LB: > { %1964 = sst [smem:[#allocation9_spill]] %s1500_s21  ;;  %s1177_s14 = sadd.s32 4294967295, %s1540_s13   ;;  %s1540_s13 = sphi %s1632_s13, %s29_s13   ;;  %s1536_s30 = sphi %s1630_s30, %s2016_s30   ;;  %s1532_s29 = sphi %s1628_s29, %s2015_s29   ;;  %s1528_s28 = sphi %s1626_s28, %s2014_s28   ;;  %s1524_s27 = sphi %s1624_s27, %s2013_s27   ;;  %s1520_s26 = sphi %s1622_s26, %s2012_s26   ;;  %s1516_s25 = sphi %s1620_s25, %s2011_s25   ;;  %s1512_s24 = sphi %s1618_s24, %s2010_s24   ;;  %s1508_s23 = sphi %s1616_s23, %s2009_s23   ;;  %s1504_s22 = sphi %s1614_s22, %s2008_s22   ;;  %s1500_s21 = sphi %s1612_s21, %s2007_s21  }
  0x12   : > { %1965 = sst [smem:[#allocation10_spill]] %s1504_s22  ;;  %s1178_s15 = sadd.s32 4294967294, %s1540_s13  }
  0x13   : > { %1966 = sst [smem:[#allocation11_spill]] %s1508_s23  ;;  %s38_s16 = sadd.s32 1, %s1532_s29 }
  0x14   : > { %1967 = sst [smem:[#allocation12_spill]] %s1512_s24  ;;  %s41_s17 = sadd.s32 1, %s1536_s30 }
  0x15   : > { %1968 = sst [smem:[#allocation13_spill]] %s1516_s25  ;;  %p39_p0 = scmp.ge.s32.totalorder %s38_s16, 4 }
  0x16   : > { %1969 = sst [smem:[#allocation14_spill]] %s1520_s26  ;;  %s319_s18 = sadd.s32 1, %s1520_s26 }
  0x17   : > { %1970 = sst [smem:[#allocation15_spill]] %s1532_s29  ;;  %p329_p1 = scmp.ne.s32.totalorder %s1520_s26, %s1516_s25 }
  0x18   : > { %1971 = sst [smem:[#allocation16_spill]] %s1536_s30  ;;  %p1674_p2 = scmp.eq.s32.totalorder %s1177_s14, 7 }
  0x19   : > { %1972 = sst [smem:[#allocation17_spill]] %s1540_s13  ;;  %s2018_s16 = smov (%p39_p0, %s38_s16), 0 }
  0x1a   : > { %1974 = sst [smem:[#allocation18_spill]] %s2018_s16  ;;  %s2020_s17 = smov (!%p39_p0, %s41_s17), %s1536_s30 }
  0x1b   : > { %p1683_p3 = por %p1674_p2, %p329_p1  ;;  %p335_p4 = scmp.ne.s32.totalorder %s1516_s25, %s1512_s24 }
  0x1c   : > { %p43_p5 = scmp.ge.s32.totalorder %s2020_s17, 2  ;;  %p1689_p6 = scmp.eq.s32.totalorder %s1178_s15, 7 }
  0x1d   : > { %s1975_s20 = scalar_select %p1683_p3, 1, 0 }
  0x1e   : > { %s343_s12 = ssub.s32 %s1532_s29, %s2018_s16  ;;  %s347_s11 = sadd.s32 1, %s1508_s23 }
  0x1f   : > { %1976 = sst [smem:[#allocation19_spill]] %s1975_s20  ;;  %s2022_s17 = smov (%p43_p5, %s2020_s17), 0 }
  0x20   : > { %1978 = sst [smem:[#allocation20_spill]] %s2022_s17  ;;  %p1700_p7 = por %p1689_p6, %p335_p4 }
  0x21   : > { %p357_p8 = scmp.ne.s32.totalorder %s1508_s23, %s1504_s22  ;;  %s316_s24 = ssub.s32 %s1536_s30, %s2022_s17 }
  0x22   : > { %s1979_s10 = scalar_select %p1700_p7, 1, 0 }
  0x23   : > { %p363_p9 = scmp.ne.s32.totalorder %s1504_s22, %s1500_s21  ;;  %p317_p10 = scmp.eq.s32.totalorder %s316_s24, 0 }
  0x24   : > { %1980 = sst [smem:[#allocation21_spill]] %s1979_s10  ;;  %s344_s15 = sor.u32 %s343_s12, %s316_s24 }
  0x25   : > { %p345_p11 = scmp.eq.s32.totalorder %s344_s15, 0  ;;  %p1712_p12 = por %p357_p8, %p1674_p2 }
  0x26   : > { %s1717_s16 = scalar_select %p317_p10, %s1520_s26, %s319_s18  }
  0x27   : > { %s1981_s20 = scalar_select %p1712_p12, 1, 0 }
  0x28   : > { %1983 = sst [smem:[#allocation23_spill]] %s1717_s16  ;;  %p1724_p13 = por %p363_p9, %p1689_p6 }
  0x29   : > { %1982 = sst [smem:[#allocation22_spill]] %s1981_s20  ;;  %p1181_p0 = scmp.ge.s32.totalorder %s1540_s13, 1 }
  0x2a   : > { %s1720_s29 = scalar_select %p345_p11, %s1508_s23, %s347_s11  }
  0x2b   : > { %s1985_s9 = scalar_select %p1724_p13, 1, 0 }
  0x2c   : > { %1984 = sst [smem:[#allocation24_spill]] %s1720_s29  ;;  %p447_p1 = scmp.lt.s32.totalorder %s1540_s13, 9 }
  0x2d   : > { %1986 = sst [smem:[#allocation25_spill]] %s1985_s9 }
  0x2e   : > { %p448_p4 = pnand %p1181_p0, %p447_p1 }
  0x2f   : > { %s1944_s12 = sand.u32 (!%p448_p4), 1, %s1516_s25   ;;  %s1945_s11 = sand.u32 (!%p448_p4), 1, %s1504_s22  }
  0x30   : > { %451 = sbr.rel (%p448_p4) target bundleno = 1548 (0x60c), region = 64  ;;  %s1734_s24 = sshll.u32 (!%p448_p4), %s1944_s12, 3 }
  0x31   : > { %s1738_s18 = sshll.u32 (!%p448_p4), %s1945_s11, 2  ;;  %p521_p2 = scmp.lt.s32.totalorder (!%p448_p4), %s1528_s28, 1 }
  0x32   : > { %p525_p5 = scmp.lt.s32.totalorder (!%p448_p4), %s1524_s27, 3  ;;  %s1987_s0 = sld [smem:[#allocation26_spill]] (!%p448_p4) }
  0x33   : > { %s1988_s1 = sld [smem:[#allocation27_spill]] (!%p448_p4)  ;;  %s513_s10 = scalar_lea.vmem (!%p448_p4), [#allocation3], %s1734_s24 }
  0x34   : > { %s1989_s2 = sld [smem:[#allocation28_spill]] (!%p448_p4)  ;;  %s520_s13 = scalar_lea.vmem (!%p448_p4), [#allocation5], %s1738_s18 }
  0x35   : > { %s522_s19 = scalar_select %p521_p2, %s1528_s28, 1 }
  0x36   : > { %s1744_s14 = scalar_select %p525_p5, %s1524_s27, 3 }
  0x37   : > { %s1184_s15 = sshll.u32 %s522_s19, 3  ;;  %p1192_p6 = scmp.ne.s32.totalorder %s1524_s27, 0 }
  0x38   : > { %s1749_s12 = scalar_lea.vmem %s1987_s0, %s1184_s15  ;;  %s1219_s11 = sshll.u32 %s1744_s14, 4 }
  0x39   : > { %s529_s29 = scalar_lea.vmem %s1988_s1, %s1219_s11  ;;  %s1761_s20 = scalar_lea.vmem %s1925_s3, %s1219_s11 }
  0x3a   : > { %s534_s21 = scalar_lea.vmem %s1989_s2, %s1219_s11  ;;  %s542_s30 = scalar_lea.vmem %s1926_s4, %s1744_s14 }
  0x3b   : > { %s545_s0 = scalar_lea.vmem %s1927_s5, %s1744_s14  ;;  %s548_s16 = scalar_lea.vmem %s1928_s6, %s1744_s14 }
  0x3c   : > { %s1191_s1 = sshll.u32 %s1744_s14, 2  ;;  %557 = sbr.rel (%p1192_p6) target bundleno = 67 (0x43), region = 68 }
  0x3d   : > { %s1779_s2 = scalar_lea.vmem %s1929_s7, %s1191_s1 }
  0x41   : > { %vm558_vm0 = vcmask 261120   ;;  %v1542_v0 = vmov 0.0  }
  0x42   : > { %559 = vst.msk [vmem:[#allocation2] sm:$0xff] %vm558_vm0, %v1542_v0 }
  0x43 PF: > { %v1382_v1 = vld [vmem:[%s534_s21 + $0x8] sm:$0xff]   ;;  %v1543_v2 = vmov 0.0   ;;  %v1384_v4 = vld [vmem:[%s534_s21] sm:$0xff]   ;;  %vm1544_vm1 = vmmov 0   ;;  %vm585_vm2 = vcmask 261120   ;;  %vm758_vm3 = vcmask 64512  }
  0x44   : > { %1245 = vmatprep.subr.bf16.mxu1 %v1543_v2  ;;  %1237 = vmatprep.subr.bf16.mxu0 %v1543_v2  ;;  %v1383_v3 = vld [vmem:[%s529_s29 + $0x8] sm:$0xff]   ;;  %v1385_v5 = vld [vmem:[%s529_s29] sm:$0xff]   ;;  %vm824_vm4 = vcmask 1043456   ;;  %vm818_vm5 = vcmask 60416   ;;  %p1208_p8 = scmp.ne.s32.totalorder %s1524_s27, 3 }
  0x45   : > { %1246 = vmatpush3.bf16.msra.mxu1 %v1382_v1  ;;  %1249 = vmatprep.mubr.msk.bf16.mxu1 %vm1544_vm1, %v1543_v2  ;;  %v1787_v6 = vld [vmem:[%s1749_s12] sm:$0xff]  ;;  %v1386_v24 = vld [vmem:[%s1761_s20 + $0x8] sm:$0xff]   ;;  %s1990_s14 = sld [smem:[#allocation29_spill]] (!%p1208_p8) }
  0x46   : > { %1238 = vmatpush3.bf16.msra.mxu0 %v1383_v3  ;;  %1247 = vmatprep.subr.bf16.mxu1 %v1543_v2  ;;  %v561_v7 = vpack.c.bf16 %v1787_v6, %v1787_v6  ;;  %v1197_v8 = vld [vmem:[%s545_s0] ss:$0 sm:$0xff]  ;;  %s1991_s17 = sld [smem:[#allocation30_spill]] (!%p1208_p8) }
  0x47   : > { %1239 = vmatprep.subr.bf16.mxu0 %v1543_v2  ;;  %1241 = vmatprep.mubr.msk.bf16.mxu0 %vm1544_vm1, %v1543_v2  ;;  %v1193_v9 = vld [vmem:[%s542_s30] ss:$0 sm:$0xff] }
  0x48   : > { %v1387_v25 = vld [vmem:[%s1761_s20] sm:$0xff]  }
  0x49   : > { %1248 = vmatpush3.bf16.msra.mxu1 %v1384_v4  ;;  %v1201_v36 = vld [vmem:[%s548_s16] ss:$0 sm:$0xff] }
  0x4a   : > { %1240 = vmatpush3.bf16.msra.mxu0 %v1385_v5  ;;  %1261 = vmatprep.subr.bf16.mxu1 %v1543_v2  ;;  %v870_v44 = vld [vmem:[%s1779_s2] sm:$0xf] }
  0x4b   : > { %1253 = vmatprep.subr.bf16.mxu0 %v1543_v2  ;;  %v875_v45 = vsel %vm824_vm4, %v870_v44, 0  ;;  %v868_v55 = vld [vmem:[#allocation2] sm:$0xff] }
  0x4c   : > { %1250 = vmatmul.mubr.msk.bf16.vlgmr.msra.gmra.mxu1 %vm585_vm2, %v561_v7 }
  0x4d   : > { %1242 = vmatmul.mubr.msk.bf16.vlgmr.msra.gmra.mxu0 %vm585_vm2, %v561_v7  ;;  %1263 = vmatprep.mubr.msk.bf16.mxu1 %vm1544_vm1, %v1543_v2 }
  0x4e   : > { %1257 = vmatprep.mubr.msk.bf16.mxu0 %vm1544_vm1, %v1543_v2  ;;  %1254 = vmatpush3.bf16.msra.mxu0 %v1386_v24 }
  0x4f   : > { %1255 = vmatprep.subr.bf16.mxu0 %v1543_v2 }
  0x52   : > { %1256 = vmatpush3.bf16.msra.mxu0 %v1387_v25 }
  0x53   : > { %1267 = vmatprep.subr.bf16.mxu0 %v1543_v2 }
  0x55   : > { %1258 = vmatmul.mubr.msk.bf16.vlgmr.msra.gmra.mxu0 %vm585_vm2, %v561_v7 }
  0x56   : > { %1269 = vmatprep.mubr.msk.bf16.mxu0 %vm1544_vm1, %v1543_v2 }
 0x10c   : > { %v686_v10 = vpop.f32.mrf.mxu1 }
 0x10d   : > { %v687_v11 = vadd.f32 %v1197_v8, %v686_v10  ;;  %v623_v12 = vpop.f32.mrf.mxu0 }
 0x10e   : > { %v624_v13 = vadd.f32 %v1193_v9, %v623_v12  ;;  %v1251_v14 = vpop.f32.mrf.mxu1 }
 0x10f   : > { %v757_v15 = vpack.c.bf16 %v687_v11, %v687_v11  ;;  %v1243_v16 = vpop.f32.mrf.mxu0 }
 0x110   : > { %v689_v17 = vpop.f32.mrf.mxu1  ;;  %v755_v19 = vmul.f32 0.35355338, %v624_v13 }
 0x111   : > { %v763_v18 = vsel %vm758_vm3, %v757_v15, 0  ;;  %v626_v20 = vpop.f32.mrf.mxu0 }
 0x112   : > { %v1252_v21 = vpop.f32.mrf.mxu1  ;;  %1262 = vmatpush3.bf16.xpose.msra.mxu1 %v763_v18  ;;  %v756_v23 = vpack.c.bf16 %v755_v19, %v755_v19 }
 0x113   : > { %v1244_v22 = vpop.f32.mrf.mxu0  ;;  %1273 = vmatprep.subr.bf16.mxu1 %v1543_v2 }
 0x115   : > { %v749_v37 = vpop.f32.mrf.mxu0 }
 0x116   : > { %v750_v38 = vadd.f32 %v1201_v36, %v749_v37 }
 0x117   : > { %v1259_v39 = vpop.f32.mrf.mxu0 }
 0x118   : > { %v820_v40 = vpack.c.bf16 %v750_v38, %v750_v38 }
 0x119   : > { %1264 = vmatmul.mubr.msk.bf16.vlgmr.msra.gmra.mxu1 %vm758_vm3, %v756_v23  ;;  %v752_v41 = vpop.f32.mrf.mxu0 }
 0x11a   : > { %1275 = vmatprep.mubr.msk.bf16.mxu1 %vm1544_vm1, %v1543_v2  ;;  %v826_v42 = vsel %vm824_vm4, %v820_v40, 0  ;;  %1274 = vmatpush3.bf16.msra.mxu1 %v875_v45 }
 0x11b   : > { %v1260_v43 = vpop.f32.mrf.mxu0  ;;  %1268 = vmatpush3.bf16.msra.mxu0 %v826_v42 }
 0x1d9   : > { %v799_v26 = vpop.f32.mrf.mxu1 }
 0x1da   : > { %v805_v27 = vsel %vm758_vm3, %v799_v26, -inf }
 0x1db   : > { %806 = vmax.xlane.f32.xlu0 %v805_v27  ;;  %v1265_v28 = vpop.f32.mrf.mxu1 }
 0x1dd   : > { %v802_v29 = vpop.f32.mrf.mxu1 }
 0x1df   : > { %v1266_v30 = vpop.f32.mrf.mxu1 }
 0x264   : > { %v807_v31 = vpop.xlane.xlu0 %806 }
 0x265   : > { %v808_v32 = vsub.f32 %v799_v26, %v807_v31 }
 0x267   : > { %v809_v33 = vmul.f32 1.442695, %v808_v32 }
 0x269   : > { %1388 = vpow2.f32 %v809_v33 }
 0x276   : > { %v1389_v34 = vpop.eup %1388 }
 0x277   : > { %v811_v35 = vsel %vm758_vm3, %v1389_v34, 0.0 }
 0x278   : > { %812 = vadd.xlane.f32.xlu0 %v811_v35 }
 0x301   : > { %v813_v46 = vpop.xlane.xlu0 %812 }
 0x302   : > { %1390 = vrcp.f32 %v813_v46 }
 0x30f   : > { %v1391_v47 = vpop.eup %1390 }
 0x310   : > { %v816_v48 = vmul.f32 %v1391_v47, %v1389_v34 }
 0x312   : > { %v817_v49 = vpack.c.bf16 %v816_v48, %v816_v48 }
 0x314   : > { %819 = vst.msk [vmem:[%s520_s13] sm:$0xf] %vm818_vm5, %v817_v49  ;;  %1270 = vmatmul.mubr.msk.bf16.vlgmr.msra.gmra.mxu0 %vm758_vm3, %v817_v49 }
 0x3d4   : > { %v862_v50 = vpop.f32.mrf.mxu0 }
 0x3d5   : > { %v869_v51 = vpack.c.bf16 %v862_v50, %v862_v50 }
 0x3d6   : > { %v1271_v52 = vpop.f32.mrf.mxu0 }
 0x3d7   : > { %1276 = vmatmul.mubr.msk.bf16.vlgmr.msra.gmra.mxu1 %vm758_vm3, %v869_v51 }
 0x3d8   : > { %v865_v53 = vpop.f32.mrf.mxu0 }
 0x3da   : > { %v1272_v54 = vpop.f32.mrf.mxu0 }
 0x497   : > { %v911_v56 = vpop.f32.mrf.mxu1 }
 0x498   : > { %v917_v57 = vadd.f32 %v911_v56, %v868_v55 }
 0x499   : > { %v1277_v58 = vpop.f32.mrf.mxu1  ;;  %922 = sbr.rel (%p1208_p8) target bundleno = 1499 (0x5db), region = 72 }
 0x49a   : > { %918 = vst.msk [vmem:[#allocation2] sm:$0xff] %vm585_vm2, %v917_v57 }
 0x49b   : > { %v914_v59 = vpop.f32.mrf.mxu1 }
 0x49d   : > { %v1278_v60 = vpop.f32.mrf.mxu1 }
 0x49e   : > { %v1209_v62 = vld [vmem:[%s1930_s8] ss:$0 sm:$0xff] }
 0x49f   : > { %v1211_v13 = vld [vmem:[%s1991_s17] ss:$0 sm:$0xff] }
 0x4a1   : > { %v923_v61 = vld [vmem:[#allocation2] sm:$0xff] }
 0x4a2   : > { %v924_v63 = vadd.f32 %v923_v61, %v1787_v6  ;;  %v1210_v6 = vld [vmem:[%s1990_s14] ss:$0 sm:$0xff] }
 0x4a4   : > { %v932_v0 = vadd.f32 %v1209_v62, %v924_v63 }
 0x4a6   : > { %v933_v1 = vsel %vm585_vm2, %v932_v0, 0.0 }
 0x4a7   : > { %934 = vadd.xlane.f32.xlu0 %v933_v1 }
 0x530   : > { %v935_v2 = vpop.xlane.xlu0 %934 }
 0x531   : > { %v937_v3 = vmul.f32 0.03125, %v935_v2 }
 0x533   : > { %v938_v4 = vsub.f32 %v932_v0, %v937_v3 }
 0x535   : > { %v939_v5 = vmul.f32 %v938_v4, %v938_v4 }
 0x537   : > { %v940_v7 = vsel %vm585_vm2, %v939_v5, 0.0 }
 0x538   : > { %941 = vadd.xlane.f32.xlu0 %v940_v7 }
 0x5c1   : > { %v942_v8 = vpop.xlane.xlu0 %941 }
 0x5c2   : > { %v943_v9 = vmul.f32 0.03125, %v942_v8 }
 0x5c4   : > { %v944_v10 = vadd.f32 1e-05, %v943_v9 }
 0x5c6   : > { %1392 = vrsqrt.f32 %v944_v10 }
 0x5d3   : > { %v1393_v11 = vpop.eup %1392 }
 0x5d4   : > { %v946_v12 = vmul.f32 %v1393_v11, %v938_v4 }
 0x5d6   : > { %v954_v14 = vmul.f32 %v1210_v6, %v946_v12 }
 0x5d8   : > { %v962_v15 = vadd.f32 %v1211_v13, %v954_v14 }
 0x5da   : > { %963 = vst.msk [vmem:[%s513_s10] sm:$0xff] %vm585_vm2, %v962_v15 }
 0x5db PF: > { %s1992_s15 = sld [smem:[#allocation13_spill]]  ;;  %s1214_s16 = sshll.u32 %s1528_s28, 7 }
 0x5dc   : > { %s1994_s1 = sld [smem:[#allocation31_spill]]  ;;  %s983_s22 = sshll.u32 %s513_s10, 4  ;;  %s984_s22 = int_to_ptr.vmem [resolvable:$true] %s983_s22 }
 0x5dd   : > { %s1394_s29 = scalar_lea.vmem %s984_s22, 128  ;;  %s1545_s2 = smov [#allocation3]  }
 0x5de   : > { %p1395_p9 = scmp.ne.s32.totalorder %s984_s22, %s1394_s29  ;;  %s1398_s20 = sshll.u32 %s1545_s2, 4  ;;  %s1399_s20 = int_to_ptr.vmem [resolvable:$false] %s1398_s20 }
 0x5df   : > { %s1400_s12 = scalar_lea.vmem %s1399_s20, 256  ;;  %p1401_p0 = scmp.lt.s32.totalorder %s984_s22, %s1399_s20 }
 0x5e0   : > { %p1396_p10 = pnand %p1395_p9, %p1683_p3  ;;  %p1402_p1 = scmp.lt.s32.totalorder %s1400_s12, %s1394_s29 }
 0x5e1   : > { %s1995_s25 = sand.u32 1, %s1992_s15  }
 0x5e2   : > { %s981_s21 = scalar_lea.hbm %s1994_s1, %s1214_s16  ;;  %s965_s0 = scalar_lea.sflag [#allocation4], %s1995_s25 }
 0x5e3   : > { %p1397_p11 = pneg %p1396_p10  ;;  %p1403_p4 = por %p1402_p1, %p1401_p0 }
 0x5e5   : > { %p1404_p2 = pnand %p1403_p4, %p1397_p11 }
 0x5e7   : > { %1407 = shalt.err (!%p1404_p2)
}
 0x5e8   : > { %s1408_s11 = scalar_lea.hbm %s981_s21, 128  ;;  %s1412_s14 = scalar_lea.hbm %s1994_s1, 256 }
 0x5e9   : > { %p1409_p5 = scmp.ne.s32.totalorder %s981_s21, %s1408_s11  ;;  %p1413_p9 = scmp.lt.s32.totalorder %s981_s21, %s1994_s1 }
 0x5ea   : > { %p1414_p10 = scmp.lt.s32.totalorder %s1412_s14, %s1408_s11 }
 0x5eb   : > { %p1410_p6 = pnand %p1409_p5, %p1683_p3 }
 0x5ec   : > { %p1415_p13 = por %p1414_p10, %p1413_p9 }
 0x5ed   : > { %p1411_p8 = pneg %p1410_p6 }
 0x5ef   : > { %p1416_p7 = pnand %p1415_p13, %p1411_p8 }
 0x5f1   : > { %1419 = shalt.err (!%p1416_p7)
}
 0x5f2   : > { %s1996_s17 = sld [smem:[#allocation10_spill]]  ;;  %s1215_s16 = sshll.u32 %s1528_s28, 2 }
 0x5f3   : > { %1279 = dma.vmem_to_hbm [thread:$0]  (%p1683_p3), %s984_s22, 128, %s981_s21, %s965_s0  }
 0x5f4   : > { %s998_s9 = sshll.u32 %s520_s13, 4  ;;  %s994_s23 = sadd.s32 %s1524_s27, %s1215_s16  ;;  %s999_s9 = int_to_ptr.vmem [resolvable:$true] %s998_s9 }
 0x5f5   : > { %s1216_s25 = sshll.u32 %s994_s23, 6  ;;  %s1998_s20 = sld [smem:[#allocation32_spill]] }
 0x5f6   : > { %s1420_s10 = scalar_lea.vmem %s999_s9, 64  ;;  %s1546_s26 = smov [#allocation5]  }
 0x5f7   : > { %p1421_p7 = scmp.ne.s32.totalorder %s999_s9, %s1420_s10  ;;  %s1424_s14 = sshll.u32 %s1546_s26, 4  ;;  %s1425_s14 = int_to_ptr.vmem [resolvable:$false] %s1424_s14 }
 0x5f8   : > { %s1999_s11 = sand.u32 1, %s1996_s17   ;;  %s1426_s28 = scalar_lea.vmem %s1425_s14, 128 }
 0x5f9   : > { %s970_s24 = scalar_lea.sflag [#allocation6], %s1999_s11  ;;  %p1422_p13 = pnand %p1421_p7, %p1712_p12 }
 0x5fa   : > { %p1427_p3 = scmp.lt.s32.totalorder %s999_s9, %s1425_s14  ;;  %p1428_p0 = scmp.lt.s32.totalorder %s1426_s28, %s1420_s10 }
 0x5fb   : > { %s996_s12 = scalar_lea.hbm %s1998_s20, %s1216_s25  ;;  %p1423_p11 = pneg %p1422_p13 }
 0x5fc   : > { %p1429_p1 = por %p1428_p0, %p1427_p3 }
 0x5fe   : > { %p1430_p4 = pnand %p1429_p1, %p1423_p11 }
 0x600   : > { %1433 = shalt.err (!%p1430_p4)
}
 0x601   : > { %s1434_s27 = scalar_lea.hbm %s996_s12, 64  ;;  %s1438_s21 = scalar_lea.hbm %s1998_s20, 512 }
 0x602   : > { %p1435_p2 = scmp.ne.s32.totalorder %s996_s12, %s1434_s27  ;;  %p1439_p8 = scmp.lt.s32.totalorder %s996_s12, %s1998_s20 }
 0x603   : > { %p1440_p9 = scmp.lt.s32.totalorder %s1438_s21, %s1434_s27 }
 0x604   : > { %p1436_p5 = pnand %p1435_p2, %p1712_p12 }
 0x605   : > { %p1441_p10 = por %p1440_p9, %p1439_p8 }
 0x606   : > { %p1437_p6 = pneg %p1436_p5 }
 0x608   : > { %p1442_p7 = pnand %p1441_p10, %p1437_p6 }
 0x60a   : > { %1445 = shalt.err (!%p1442_p7)
}
 0x60b   : > { %1280 = dma.vmem_to_hbm [thread:$0]  (%p1712_p12), %s999_s9, 64, %s996_s12, %s970_s24  }
 0x60c PF: > { %s2000_s19 = sld [smem:[#allocation17_spill]] }
 0x60d   : > { %s2001_s30 = sld [smem:[#allocation12_spill]] }
 0x60e   : > { %s2002_s17 = sld [smem:[#allocation21_spill]] }
 0x612   : > { %p1290_p13 = scmp.ge.s32.totalorder %s2000_s19, 2 }
 0x613   : > { %s1010_s16 = sand.u32 1, %s2001_s30  }
 0x614   : > { %p2003_p11 = scmp.ne.s32.totalorder %s2002_s17, 0  ;;  %s1011_s23 = scalar_lea.sflag [#allocation4], %s1010_s16 }
 0x616   : > { %p1284_p3 = pnand %p1290_p13, %p2003_p11 }
 0x618   : > { %p1285_p0 = pneg %p1284_p3 }
 0x61a   : > { %1491 = dma.done.wait (%p1285_p0), %s1011_s23, 128  }
 0x61b   : > { %1493 = vsyncadd (%p1285_p0), %s1011_s23, 4294967168  ;;  %s2004_s25 = sld [smem:[#allocation9_spill]] }
 0x61c   : > { %s2005_s29 = sld [smem:[#allocation25_spill]] }
 0x621   : > { %s1019_s2 = sand.u32 1, %s2004_s25  }
 0x622   : > { %p2006_p1 = scmp.ne.s32.totalorder %s2005_s29, 0  ;;  %s1020_s15 = scalar_lea.sflag [#allocation6], %s1019_s2 }
 0x624   : > { %p1287_p4 = pnand %p1290_p13, %p2006_p1 }
 0x626   : > { %p1288_p2 = pneg %p1287_p4 }
 0x628   : > { %1495 = dma.done.wait (%p1288_p2), %s1020_s15, 64  }
 0x629   : > { %1497 = vsyncadd (%p1288_p2), %s1020_s15, 4294967232  ;;  %s29_s13 = sadd.s32 1, %s2000_s19   ;;  %s2007_s21 = sld [smem:[#allocation10_spill]] }
 0x62a   : > { %p26_p12 = scmp.ge.s32.totalorder %s29_s13, 10   ;;  %s2008_s22 = sld [smem:[#allocation11_spill]] }
 0x62b   : > { %s2009_s23 = sld [smem:[#allocation24_spill]] }
 0x62c   : > { %s2010_s24 = sld [smem:[#allocation13_spill]] }
 0x62d   : > { %s2011_s25 = sld [smem:[#allocation14_spill]] }
 0x62e   : > { %s2012_s26 = sld [smem:[#allocation23_spill]]  ;;  %28 = sbr.rel (!%p26_p12) target bundleno = 17 (0x11), region = 145 }
 0x62f   : > { %s2013_s27 = sld [smem:[#allocation15_spill]] }
 0x630   : > { %s2014_s28 = sld [smem:[#allocation16_spill]] }
 0x631   : > { %s2015_s29 = sld [smem:[#allocation18_spill]] }
 0x632   : > { %s2016_s30 = sld [smem:[#allocation20_spill]] }
 0x633   :  { %1025 = vsyncpa [#allocation4], 1 }
 0x634   :  { %1027 = vsyncpa [#allocation4 + $0x1], 1 }
 0x635   :  { %1028 = vsyncpa [#allocation6], 1 }
 0x636   :  { %1030 = vsyncpa [#allocation6 + $0x1], 1 }

</bundles_post_ra>
